<compile_context>
chip_gen: v7x
topology: tpu7x:2x2x1
jax: 0.10.0
libtpu: 0.0.40
codegen_flags: <defaults>
</compile_context>

<pallas_src>
import functools

import jax
import jax.numpy as jnp
from jax import lax
from jax.experimental import pallas as pl
from jax.experimental.pallas import tpu as pltpu  # noqa: F401  (TPU backend)


def gru_encoder_kernel(src_ref, wex_ref, wh_ref, bx_ref, bhn_ref, h_ref,
                       *, seq_len, batch, hid):
    """Fused embedding-gather + single-layer unidirectional GRU.

    src_ref: (S*B, 1)  int32 token ids (time-major, batch padded to sublane group)
    wex_ref: (V, 3H)   emb_table @ [Wx_r|Wx_z|Wx_n]   (folded emb + input proj)
    wh_ref : (H, 3H)   [Wh_r|Wh_z|Wh_n]               (pre-transposed, gate-concat)
    bx_ref : (1, 3H)   [b_ir+b_hr | b_iz+b_hz | b_in] (folded input-side biases)
    bhn_ref: (1, H)    b_hn (must stay inside r * (...) per GRU semantics)
    h_ref  : (1, B, H) final hidden state output
    """
    vocab = wex_ref.shape[0]
    sb = seq_len * batch

    # ---- Prologue: exact embedding gather folded into the input projection ----
    ids = src_ref[...]                                          # (S*B, 1) int32
    iota = lax.broadcasted_iota(jnp.int32, (sb, vocab), 1)      # (S*B, V)
    onehot = (iota == ids).astype(jnp.float32)                  # exact 0/1
    gx = jnp.dot(onehot, wex_ref[...],
                 preferred_element_type=jnp.float32) + bx_ref[...]   # (S*B, 3H)
    # dropout(p=0.0) == identity

    wh = wh_ref[...]                                            # (H, 3H)
    b_hn = jnp.broadcast_to(bhn_ref[...], (batch, hid))         # hoisted broadcast

    # ---- Serial recurrence: ONE (B,H)@(H,3H) matmul per step, unrolled ----
    h = jnp.zeros((batch, hid), jnp.float32)
    for t in range(seq_len):
        lo = t * batch                           # sublane-aligned (batch == 8)
        gx_t = gx[lo:lo + batch, :]              # (B, 3H)
        gh = jnp.dot(h, wh, preferred_element_type=jnp.float32)   # (B, 3H)
        rz = jax.nn.sigmoid(gx_t[:, :2 * hid] + gh[:, :2 * hid])  # one EUP push
        r = rz[:, :hid]
        z = rz[:, hid:]
        n = jnp.tanh(gx_t[:, 2 * hid:] + r * (gh[:, 2 * hid:] + b_hn))
        h = n + z * (h - n)                      # == (1-z)*n + z*h

    h_ref[0] = h


def init_params(key, vocab_size, emb_dim, hid_dim):
    """Deterministic parameter init (same shapes as nn.Embedding + nn.GRU)."""
    k_emb, k_wih, k_whh, k_bih, k_bhh = jax.random.split(key, 5)
    bound = 1.0 / jnp.sqrt(jnp.float32(hid_dim))
    emb_table = jax.random.normal(k_emb, (vocab_size, emb_dim), jnp.float32)
    w_ih = jax.random.uniform(k_wih, (3 * hid_dim, emb_dim), jnp.float32, -bound, bound)
    w_hh = jax.random.uniform(k_whh, (3 * hid_dim, hid_dim), jnp.float32, -bound, bound)
    b_ih = jax.random.uniform(k_bih, (1, 3 * hid_dim), jnp.float32, -bound, bound)
    b_hh = jax.random.uniform(k_bhh, (1, 3 * hid_dim), jnp.float32, -bound, bound)
    return emb_table, w_ih, w_hh, b_ih, b_hh


def encoder_forward(source, params):
    """source: (seq_len, batch) int32 -> hidden (1, batch, hid_dim) float32."""
    emb_table, w_ih, w_hh, b_ih, b_hh = params
    seq_len, batch = source.shape
    vocab, emb_dim = emb_table.shape
    hid = w_hh.shape[1]

    # Pad batch to a full sublane group (multiple of 8).
    b_pad = max(8, ((batch + 7) // 8) * 8)

    # ---- Parameter-only precompute in the wrapper (free layout plumbing) ----
    wx = w_ih.T                                                      # (E, 3H) r|z|n
    w_ex = jnp.dot(emb_table, wx, precision=lax.Precision.HIGHEST)   # (V, 3H)
    wh = w_hh.T                                                      # (H, 3H)
    bx = jnp.concatenate(
        [b_ih[:, :2 * hid] + b_hh[:, :2 * hid], b_ih[:, 2 * hid:]], axis=1)  # (1, 3H)
    b_hn = b_hh[:, 2 * hid:]                                         # (1, H)

    # Time-major flattened ids; padded rows use token 0 (valid) and are dropped.
    src_pad = jnp.zeros((seq_len, b_pad), jnp.int32).at[:, :batch].set(
        source.astype(jnp.int32))
    src_flat = src_pad.reshape(seq_len * b_pad, 1)

    kernel = functools.partial(gru_encoder_kernel,
                               seq_len=seq_len, batch=b_pad, hid=hid)

    def full(shape):
        nd = len(shape)
        return pl.BlockSpec(shape, lambda i, _nd=nd: (0,) * _nd)

    hidden = pl.pallas_call(
        kernel,
        out_shape=jax.ShapeDtypeStruct((1, b_pad, hid), jnp.float32),
        grid=(1,),
        in_specs=[
            full((seq_len * b_pad, 1)),     # token ids
            full((vocab, 3 * hid)),         # folded emb @ Wx
            full((hid, 3 * hid)),           # Wh (gate-concat)
            full((1, 3 * hid)),             # folded input-side biases
            full((1, hid)),                 # b_hn
        ],
        out_specs=full((1, b_pad, hid)),
    )(src_flat, w_ex, wh, bx, b_hn)
    return hidden[:, :batch, :]


def encoder_forward_ref(source, params):
    """Pure-JAX reference (PyTorch GRU semantics) for correctness checking."""
    emb_table, w_ih, w_hh, b_ih, b_hh = params
    embedded = jnp.take(emb_table, source, axis=0)
    hid = w_hh.shape[1]

    def step(h, x_t):
        gx = x_t @ w_ih.T + b_ih
        gh = h @ w_hh.T + b_hh
        r = jax.nn.sigmoid(gx[:, :hid] + gh[:, :hid])
        z = jax.nn.sigmoid(gx[:, hid:2 * hid] + gh[:, hid:2 * hid])
        n = jnp.tanh(gx[:, 2 * hid:] + r * gh[:, 2 * hid:])
        h_new = (1.0 - z) * n + z * h
        return h_new, None

    h0 = jnp.zeros((source.shape[1], hid), jnp.float32)
    h_final, _ = lax.scan(step, h0, embedded)
    return h_final[None]


if __name__ == "__main__":
    # Small shapes consistent with the module: seq=8, batch=2, vocab=50,
    # emb_dim=32, hid_dim=32, n_layers=1, n_directions=1, dropout=0.0.
    vocab_size, emb_dim, hid_dim = 50, 32, 32
    seq_len, batch = 8, 2

    key = jax.random.PRNGKey(0)
    k_params, k_src = jax.random.split(key)
    params = init_params(k_params, vocab_size, emb_dim, hid_dim)
    source = jax.random.randint(k_src, (seq_len, batch), 0, vocab_size, dtype=jnp.int32)

    hidden = encoder_forward(source, params)
    hidden = jax.block_until_ready(hidden)

    ref = jax.block_until_ready(encoder_forward_ref(source, params))
    assert hidden.shape == (1, batch, hid_dim)
    assert jnp.allclose(hidden, ref, atol=1e-5, rtol=1e-5), "mismatch vs reference"

    print("KERNEL_OK")
</pallas_src>

<mosaic_0001>
module attributes {stable_mosaic.version = 11 : i64} {
  func.func @gru_encoder_kernel(%arg0: i32, %arg1: memref<64x1xi32, #tpu.memory_space<vmem>>, %arg2: memref<50x96xf32, #tpu.memory_space<vmem>>, %arg3: memref<32x96xf32, #tpu.memory_space<vmem>>, %arg4: memref<1x96xf32, #tpu.memory_space<vmem>>, %arg5: memref<1x32xf32, #tpu.memory_space<vmem>>, %arg6: memref<1x8x32xf32, #tpu.memory_space<vmem>>) attributes {dimension_semantics = [#tpu.dimension_semantics<arbitrary>], iteration_bounds = array<i64: 1>, scalar_prefetch = 0 : i64, scratch_operands = 0 : i64, tpu.core_type = #tpu.core_type<tc>, window_params = [{pipeline_mode = #tpu.pipeline_mode<synchronous>, transform_indices = @transform_0, window_bounds = array<i64: 64, 1>}, {pipeline_mode = #tpu.pipeline_mode<synchronous>, transform_indices = @transform_1, window_bounds = array<i64: 50, 96>}, {pipeline_mode = #tpu.pipeline_mode<synchronous>, transform_indices = @transform_2, window_bounds = array<i64: 32, 96>}, {pipeline_mode = #tpu.pipeline_mode<synchronous>, transform_indices = @transform_3, window_bounds = array<i64: 1, 96>}, {pipeline_mode = #tpu.pipeline_mode<synchronous>, transform_indices = @transform_4, window_bounds = array<i64: 1, 32>}, {pipeline_mode = #tpu.pipeline_mode<synchronous>, transform_indices = @transform_5, window_bounds = array<i64: 1, 8, 32>}]} {
    %c0 = arith.constant 0 : index
    %c0_0 = arith.constant 0 : index
    %0 = vector.load %arg1[%c0, %c0_0] : memref<64x1xi32, #tpu.memory_space<vmem>>, vector<64x1xi32>
    %1 = tpu.iota {dimensions = array<i32: 1>} : vector<64x50xi32>
    %2 = vector.broadcast %0 : vector<64x1xi32> to vector<64x50xi32>
    %3 = arith.cmpi eq, %1, %2 : vector<64x50xi32>
    %4 = arith.extui %3 : vector<64x50xi1> to vector<64x50xi32>
    %5 = arith.sitofp %4 : vector<64x50xi32> to vector<64x50xf32>
    %c0_1 = arith.constant 0 : index
    %c0_2 = arith.constant 0 : index
    %6 = vector.load %arg2[%c0_1, %c0_2] : memref<50x96xf32, #tpu.memory_space<vmem>>, vector<50x96xf32>
    %cst = arith.constant dense<0.000000e+00> : vector<64x96xf32>
    %7 = tpu.matmul %5, %6, %cst {dimension_numbers = #tpu.dot_dimension_numbers<[1], [0], [0], [1], [0, 0, 1, 1], [], []>} : vector<64x50xf32>, vector<50x96xf32>, vector<64x96xf32> -> vector<64x96xf32>
    %c0_3 = arith.constant 0 : index
    %c0_4 = arith.constant 0 : index
    %8 = vector.load %arg4[%c0_3, %c0_4] : memref<1x96xf32, #tpu.memory_space<vmem>>, vector<1x96xf32>
    %9 = vector.broadcast %8 : vector<1x96xf32> to vector<64x96xf32>
    %10 = arith.addf %7, %9 : vector<64x96xf32>
    %c0_5 = arith.constant 0 : index
    %c0_6 = arith.constant 0 : index
    %11 = vector.load %arg3[%c0_5, %c0_6] : memref<32x96xf32, #tpu.memory_space<vmem>>, vector<32x96xf32>
    %c0_7 = arith.constant 0 : index
    %c0_8 = arith.constant 0 : index
    %12 = vector.load %arg5[%c0_7, %c0_8] : memref<1x32xf32, #tpu.memory_space<vmem>>, vector<1x32xf32>
    %13 = vector.shape_cast %12 : vector<1x32xf32> to vector<1x32xf32>
    %14 = vector.broadcast %13 : vector<1x32xf32> to vector<8x32xf32>
    %cst_9 = arith.constant 0.000000e+00 : f32
    %15 = vector.broadcast %cst_9 : f32 to vector<8x32xf32>
    %16 = vector.extract_strided_slice %10 {offsets = [0, 0], sizes = [8, 96], strides = [1, 1]} : vector<64x96xf32> to vector<8x96xf32>
    %cst_10 = arith.constant dense<0.000000e+00> : vector<8x96xf32>
    %17 = tpu.matmul %15, %11, %cst_10 {dimension_numbers = #tpu.dot_dimension_numbers<[1], [0], [0], [1], [0, 0, 1, 1], [], []>} : vector<8x32xf32>, vector<32x96xf32>, vector<8x96xf32> -> vector<8x96xf32>
    %18 = vector.extract_strided_slice %16 {offsets = [0, 0], sizes = [8, 64], strides = [1, 1]} : vector<8x96xf32> to vector<8x64xf32>
    %19 = vector.extract_strided_slice %17 {offsets = [0, 0], sizes = [8, 64], strides = [1, 1]} : vector<8x96xf32> to vector<8x64xf32>
    %20 = arith.addf %18, %19 : vector<8x64xf32>
    %21 = arith.negf %20 : vector<8x64xf32>
    %22 = math.exp %21 : vector<8x64xf32>
    %cst_11 = arith.constant 1.000000e+00 : f32
    %23 = vector.broadcast %cst_11 : f32 to vector<8x64xf32>
    %24 = arith.addf %23, %22 : vector<8x64xf32>
    %25 = arith.divf %23, %24 : vector<8x64xf32>
    %26 = vector.extract_strided_slice %25 {offsets = [0, 0], sizes = [8, 32], strides = [1, 1]} : vector<8x64xf32> to vector<8x32xf32>
    %27 = vector.extract_strided_slice %25 {offsets = [0, 32], sizes = [8, 32], strides = [1, 1]} : vector<8x64xf32> to vector<8x32xf32>
    %28 = vector.extract_strided_slice %16 {offsets = [0, 64], sizes = [8, 32], strides = [1, 1]} : vector<8x96xf32> to vector<8x32xf32>
    %29 = vector.extract_strided_slice %17 {offsets = [0, 64], sizes = [8, 32], strides = [1, 1]} : vector<8x96xf32> to vector<8x32xf32>
    %30 = arith.addf %29, %14 : vector<8x32xf32>
    %31 = arith.mulf %26, %30 : vector<8x32xf32>
    %32 = arith.addf %28, %31 : vector<8x32xf32>
    %33 = math.tanh %32 : vector<8x32xf32>
    %34 = arith.subf %15, %33 : vector<8x32xf32>
    %35 = arith.mulf %27, %34 : vector<8x32xf32>
    %36 = arith.addf %33, %35 : vector<8x32xf32>
    %37 = vector.extract_strided_slice %10 {offsets = [8, 0], sizes = [8, 96], strides = [1, 1]} : vector<64x96xf32> to vector<8x96xf32>
    %cst_12 = arith.constant dense<0.000000e+00> : vector<8x96xf32>
    %38 = tpu.matmul %36, %11, %cst_12 {dimension_numbers = #tpu.dot_dimension_numbers<[1], [0], [0], [1], [0, 0, 1, 1], [], []>} : vector<8x32xf32>, vector<32x96xf32>, vector<8x96xf32> -> vector<8x96xf32>
    %39 = vector.extract_strided_slice %37 {offsets = [0, 0], sizes = [8, 64], strides = [1, 1]} : vector<8x96xf32> to vector<8x64xf32>
    %40 = vector.extract_strided_slice %38 {offsets = [0, 0], sizes = [8, 64], strides = [1, 1]} : vector<8x96xf32> to vector<8x64xf32>
    %41 = arith.addf %39, %40 : vector<8x64xf32>
    %42 = arith.negf %41 : vector<8x64xf32>
    %43 = math.exp %42 : vector<8x64xf32>
    %cst_13 = arith.constant 1.000000e+00 : f32
    %44 = vector.broadcast %cst_13 : f32 to vector<8x64xf32>
    %45 = arith.addf %44, %43 : vector<8x64xf32>
    %46 = arith.divf %44, %45 : vector<8x64xf32>
    %47 = vector.extract_strided_slice %46 {offsets = [0, 0], sizes = [8, 32], strides = [1, 1]} : vector<8x64xf32> to vector<8x32xf32>
    %48 = vector.extract_strided_slice %46 {offsets = [0, 32], sizes = [8, 32], strides = [1, 1]} : vector<8x64xf32> to vector<8x32xf32>
    %49 = vector.extract_strided_slice %37 {offsets = [0, 64], sizes = [8, 32], strides = [1, 1]} : vector<8x96xf32> to vector<8x32xf32>
    %50 = vector.extract_strided_slice %38 {offsets = [0, 64], sizes = [8, 32], strides = [1, 1]} : vector<8x96xf32> to vector<8x32xf32>
    %51 = arith.addf %50, %14 : vector<8x32xf32>
    %52 = arith.mulf %47, %51 : vector<8x32xf32>
    %53 = arith.addf %49, %52 : vector<8x32xf32>
    %54 = math.tanh %53 : vector<8x32xf32>
    %55 = arith.subf %36, %54 : vector<8x32xf32>
    %56 = arith.mulf %48, %55 : vector<8x32xf32>
    %57 = arith.addf %54, %56 : vector<8x32xf32>
    %58 = vector.extract_strided_slice %10 {offsets = [16, 0], sizes = [8, 96], strides = [1, 1]} : vector<64x96xf32> to vector<8x96xf32>
    %cst_14 = arith.constant dense<0.000000e+00> : vector<8x96xf32>
    %59 = tpu.matmul %57, %11, %cst_14 {dimension_numbers = #tpu.dot_dimension_numbers<[1], [0], [0], [1], [0, 0, 1, 1], [], []>} : vector<8x32xf32>, vector<32x96xf32>, vector<8x96xf32> -> vector<8x96xf32>
    %60 = vector.extract_strided_slice %58 {offsets = [0, 0], sizes = [8, 64], strides = [1, 1]} : vector<8x96xf32> to vector<8x64xf32>
    %61 = vector.extract_strided_slice %59 {offsets = [0, 0], sizes = [8, 64], strides = [1, 1]} : vector<8x96xf32> to vector<8x64xf32>
    %62 = arith.addf %60, %61 : vector<8x64xf32>
    %63 = arith.negf %62 : vector<8x64xf32>
    %64 = math.exp %63 : vector<8x64xf32>
    %cst_15 = arith.constant 1.000000e+00 : f32
    %65 = vector.broadcast %cst_15 : f32 to vector<8x64xf32>
    %66 = arith.addf %65, %64 : vector<8x64xf32>
    %67 = arith.divf %65, %66 : vector<8x64xf32>
    %68 = vector.extract_strided_slice %67 {offsets = [0, 0], sizes = [8, 32], strides = [1, 1]} : vector<8x64xf32> to vector<8x32xf32>
    %69 = vector.extract_strided_slice %67 {offsets = [0, 32], sizes = [8, 32], strides = [1, 1]} : vector<8x64xf32> to vector<8x32xf32>
    %70 = vector.extract_strided_slice %58 {offsets = [0, 64], sizes = [8, 32], strides = [1, 1]} : vector<8x96xf32> to vector<8x32xf32>
    %71 = vector.extract_strided_slice %59 {offsets = [0, 64], sizes = [8, 32], strides = [1, 1]} : vector<8x96xf32> to vector<8x32xf32>
    %72 = arith.addf %71, %14 : vector<8x32xf32>
    %73 = arith.mulf %68, %72 : vector<8x32xf32>
    %74 = arith.addf %70, %73 : vector<8x32xf32>
    %75 = math.tanh %74 : vector<8x32xf32>
    %76 = arith.subf %57, %75 : vector<8x32xf32>
    %77 = arith.mulf %69, %76 : vector<8x32xf32>
    %78 = arith.addf %75, %77 : vector<8x32xf32>
    %79 = vector.extract_strided_slice %10 {offsets = [24, 0], sizes = [8, 96], strides = [1, 1]} : vector<64x96xf32> to vector<8x96xf32>
    %cst_16 = arith.constant dense<0.000000e+00> : vector<8x96xf32>
    %80 = tpu.matmul %78, %11, %cst_16 {dimension_numbers = #tpu.dot_dimension_numbers<[1], [0], [0], [1], [0, 0, 1, 1], [], []>} : vector<8x32xf32>, vector<32x96xf32>, vector<8x96xf32> -> vector<8x96xf32>
    %81 = vector.extract_strided_slice %79 {offsets = [0, 0], sizes = [8, 64], strides = [1, 1]} : vector<8x96xf32> to vector<8x64xf32>
    %82 = vector.extract_strided_slice %80 {offsets = [0, 0], sizes = [8, 64], strides = [1, 1]} : vector<8x96xf32> to vector<8x64xf32>
    %83 = arith.addf %81, %82 : vector<8x64xf32>
    %84 = arith.negf %83 : vector<8x64xf32>
    %85 = math.exp %84 : vector<8x64xf32>
    %cst_17 = arith.constant 1.000000e+00 : f32
    %86 = vector.broadcast %cst_17 : f32 to vector<8x64xf32>
    %87 = arith.addf %86, %85 : vector<8x64xf32>
    %88 = arith.divf %86, %87 : vector<8x64xf32>
    %89 = vector.extract_strided_slice %88 {offsets = [0, 0], sizes = [8, 32], strides = [1, 1]} : vector<8x64xf32> to vector<8x32xf32>
    %90 = vector.extract_strided_slice %88 {offsets = [0, 32], sizes = [8, 32], strides = [1, 1]} : vector<8x64xf32> to vector<8x32xf32>
    %91 = vector.extract_strided_slice %79 {offsets = [0, 64], sizes = [8, 32], strides = [1, 1]} : vector<8x96xf32> to vector<8x32xf32>
    %92 = vector.extract_strided_slice %80 {offsets = [0, 64], sizes = [8, 32], strides = [1, 1]} : vector<8x96xf32> to vector<8x32xf32>
    %93 = arith.addf %92, %14 : vector<8x32xf32>
    %94 = arith.mulf %89, %93 : vector<8x32xf32>
    %95 = arith.addf %91, %94 : vector<8x32xf32>
    %96 = math.tanh %95 : vector<8x32xf32>
    %97 = arith.subf %78, %96 : vector<8x32xf32>
    %98 = arith.mulf %90, %97 : vector<8x32xf32>
    %99 = arith.addf %96, %98 : vector<8x32xf32>
    %100 = vector.extract_strided_slice %10 {offsets = [32, 0], sizes = [8, 96], strides = [1, 1]} : vector<64x96xf32> to vector<8x96xf32>
    %cst_18 = arith.constant dense<0.000000e+00> : vector<8x96xf32>
    %101 = tpu.matmul %99, %11, %cst_18 {dimension_numbers = #tpu.dot_dimension_numbers<[1], [0], [0], [1], [0, 0, 1, 1], [], []>} : vector<8x32xf32>, vector<32x96xf32>, vector<8x96xf32> -> vector<8x96xf32>
    %102 = vector.extract_strided_slice %100 {offsets = [0, 0], sizes = [8, 64], strides = [1, 1]} : vector<8x96xf32> to vector<8x64xf32>
    %103 = vector.extract_strided_slice %101 {offsets = [0, 0], sizes = [8, 64], strides = [1, 1]} : vector<8x96xf32> to vector<8x64xf32>
    %104 = arith.addf %102, %103 : vector<8x64xf32>
    %105 = arith.negf %104 : vector<8x64xf32>
    %106 = math.exp %105 : vector<8x64xf32>
    %cst_19 = arith.constant 1.000000e+00 : f32
    %107 = vector.broadcast %cst_19 : f32 to vector<8x64xf32>
    %108 = arith.addf %107, %106 : vector<8x64xf32>
    %109 = arith.divf %107, %108 : vector<8x64xf32>
    %110 = vector.extract_strided_slice %109 {offsets = [0, 0], sizes = [8, 32], strides = [1, 1]} : vector<8x64xf32> to vector<8x32xf32>
    %111 = vector.extract_strided_slice %109 {offsets = [0, 32], sizes = [8, 32], strides = [1, 1]} : vector<8x64xf32> to vector<8x32xf32>
    %112 = vector.extract_strided_slice %100 {offsets = [0, 64], sizes = [8, 32], strides = [1, 1]} : vector<8x96xf32> to vector<8x32xf32>
    %113 = vector.extract_strided_slice %101 {offsets = [0, 64], sizes = [8, 32], strides = [1, 1]} : vector<8x96xf32> to vector<8x32xf32>
    %114 = arith.addf %113, %14 : vector<8x32xf32>
    %115 = arith.mulf %110, %114 : vector<8x32xf32>
    %116 = arith.addf %112, %115 : vector<8x32xf32>
    %117 = math.tanh %116 : vector<8x32xf32>
    %118 = arith.subf %99, %117 : vector<8x32xf32>
    %119 = arith.mulf %111, %118 : vector<8x32xf32>
    %120 = arith.addf %117, %119 : vector<8x32xf32>
    %121 = vector.extract_strided_slice %10 {offsets = [40, 0], sizes = [8, 96], strides = [1, 1]} : vector<64x96xf32> to vector<8x96xf32>
    %cst_20 = arith.constant dense<0.000000e+00> : vector<8x96xf32>
    %122 = tpu.matmul %120, %11, %cst_20 {dimension_numbers = #tpu.dot_dimension_numbers<[1], [0], [0], [1], [0, 0, 1, 1], [], []>} : vector<8x32xf32>, vector<32x96xf32>, vector<8x96xf32> -> vector<8x96xf32>
    %123 = vector.extract_strided_slice %121 {offsets = [0, 0], sizes = [8, 64], strides = [1, 1]} : vector<8x96xf32> to vector<8x64xf32>
    %124 = vector.extract_strided_slice %122 {offsets = [0, 0], sizes = [8, 64], strides = [1, 1]} : vector<8x96xf32> to vector<8x64xf32>
    %125 = arith.addf %123, %124 : vector<8x64xf32>
    %126 = arith.negf %125 : vector<8x64xf32>
    %127 = math.exp %126 : vector<8x64xf32>
    %cst_21 = arith.constant 1.000000e+00 : f32
    %128 = vector.broadcast %cst_21 : f32 to vector<8x64xf32>
    %129 = arith.addf %128, %127 : vector<8x64xf32>
    %130 = arith.divf %128, %129 : vector<8x64xf32>
    %131 = vector.extract_strided_slice %130 {offsets = [0, 0], sizes = [8, 32], strides = [1, 1]} : vector<8x64xf32> to vector<8x32xf32>
    %132 = vector.extract_strided_slice %130 {offsets = [0, 32], sizes = [8, 32], strides = [1, 1]} : vector<8x64xf32> to vector<8x32xf32>
    %133 = vector.extract_strided_slice %121 {offsets = [0, 64], sizes = [8, 32], strides = [1, 1]} : vector<8x96xf32> to vector<8x32xf32>
    %134 = vector.extract_strided_slice %122 {offsets = [0, 64], sizes = [8, 32], strides = [1, 1]} : vector<8x96xf32> to vector<8x32xf32>
    %135 = arith.addf %134, %14 : vector<8x32xf32>
    %136 = arith.mulf %131, %135 : vector<8x32xf32>
    %137 = arith.addf %133, %136 : vector<8x32xf32>
    %138 = math.tanh %137 : vector<8x32xf32>
    %139 = arith.subf %120, %138 : vector<8x32xf32>
    %140 = arith.mulf %132, %139 : vector<8x32xf32>
    %141 = arith.addf %138, %140 : vector<8x32xf32>
    %142 = vector.extract_strided_slice %10 {offsets = [48, 0], sizes = [8, 96], strides = [1, 1]} : vector<64x96xf32> to vector<8x96xf32>
    %cst_22 = arith.constant dense<0.000000e+00> : vector<8x96xf32>
    %143 = tpu.matmul %141, %11, %cst_22 {dimension_numbers = #tpu.dot_dimension_numbers<[1], [0], [0], [1], [0, 0, 1, 1], [], []>} : vector<8x32xf32>, vector<32x96xf32>, vector<8x96xf32> -> vector<8x96xf32>
    %144 = vector.extract_strided_slice %142 {offsets = [0, 0], sizes = [8, 64], strides = [1, 1]} : vector<8x96xf32> to vector<8x64xf32>
    %145 = vector.extract_strided_slice %143 {offsets = [0, 0], sizes = [8, 64], strides = [1, 1]} : vector<8x96xf32> to vector<8x64xf32>
    %146 = arith.addf %144, %145 : vector<8x64xf32>
    %147 = arith.negf %146 : vector<8x64xf32>
    %148 = math.exp %147 : vector<8x64xf32>
    %cst_23 = arith.constant 1.000000e+00 : f32
    %149 = vector.broadcast %cst_23 : f32 to vector<8x64xf32>
    %150 = arith.addf %149, %148 : vector<8x64xf32>
    %151 = arith.divf %149, %150 : vector<8x64xf32>
    %152 = vector.extract_strided_slice %151 {offsets = [0, 0], sizes = [8, 32], strides = [1, 1]} : vector<8x64xf32> to vector<8x32xf32>
    %153 = vector.extract_strided_slice %151 {offsets = [0, 32], sizes = [8, 32], strides = [1, 1]} : vector<8x64xf32> to vector<8x32xf32>
    %154 = vector.extract_strided_slice %142 {offsets = [0, 64], sizes = [8, 32], strides = [1, 1]} : vector<8x96xf32> to vector<8x32xf32>
    %155 = vector.extract_strided_slice %143 {offsets = [0, 64], sizes = [8, 32], strides = [1, 1]} : vector<8x96xf32> to vector<8x32xf32>
    %156 = arith.addf %155, %14 : vector<8x32xf32>
    %157 = arith.mulf %152, %156 : vector<8x32xf32>
    %158 = arith.addf %154, %157 : vector<8x32xf32>
    %159 = math.tanh %158 : vector<8x32xf32>
    %160 = arith.subf %141, %159 : vector<8x32xf32>
    %161 = arith.mulf %153, %160 : vector<8x32xf32>
    %162 = arith.addf %159, %161 : vector<8x32xf32>
    %163 = vector.extract_strided_slice %10 {offsets = [56, 0], sizes = [8, 96], strides = [1, 1]} : vector<64x96xf32> to vector<8x96xf32>
    %cst_24 = arith.constant dense<0.000000e+00> : vector<8x96xf32>
    %164 = tpu.matmul %162, %11, %cst_24 {dimension_numbers = #tpu.dot_dimension_numbers<[1], [0], [0], [1], [0, 0, 1, 1], [], []>} : vector<8x32xf32>, vector<32x96xf32>, vector<8x96xf32> -> vector<8x96xf32>
    %165 = vector.extract_strided_slice %163 {offsets = [0, 0], sizes = [8, 64], strides = [1, 1]} : vector<8x96xf32> to vector<8x64xf32>
    %166 = vector.extract_strided_slice %164 {offsets = [0, 0], sizes = [8, 64], strides = [1, 1]} : vector<8x96xf32> to vector<8x64xf32>
    %167 = arith.addf %165, %166 : vector<8x64xf32>
    %168 = arith.negf %167 : vector<8x64xf32>
    %169 = math.exp %168 : vector<8x64xf32>
    %cst_25 = arith.constant 1.000000e+00 : f32
    %170 = vector.broadcast %cst_25 : f32 to vector<8x64xf32>
    %171 = arith.addf %170, %169 : vector<8x64xf32>
    %172 = arith.divf %170, %171 : vector<8x64xf32>
    %173 = vector.extract_strided_slice %172 {offsets = [0, 0], sizes = [8, 32], strides = [1, 1]} : vector<8x64xf32> to vector<8x32xf32>
    %174 = vector.extract_strided_slice %172 {offsets = [0, 32], sizes = [8, 32], strides = [1, 1]} : vector<8x64xf32> to vector<8x32xf32>
    %175 = vector.extract_strided_slice %163 {offsets = [0, 64], sizes = [8, 32], strides = [1, 1]} : vector<8x96xf32> to vector<8x32xf32>
    %176 = vector.extract_strided_slice %164 {offsets = [0, 64], sizes = [8, 32], strides = [1, 1]} : vector<8x96xf32> to vector<8x32xf32>
    %177 = arith.addf %176, %14 : vector<8x32xf32>
    %178 = arith.mulf %173, %177 : vector<8x32xf32>
    %179 = arith.addf %175, %178 : vector<8x32xf32>
    %180 = math.tanh %179 : vector<8x32xf32>
    %181 = arith.subf %162, %180 : vector<8x32xf32>
    %182 = arith.mulf %174, %181 : vector<8x32xf32>
    %183 = arith.addf %180, %182 : vector<8x32xf32>
    %c0_26 = arith.constant 0 : index
    %c0_27 = arith.constant 0 : index
    %c0_28 = arith.constant 0 : index
    %184 = vector.load %arg6[%c0_26, %c0_27, %c0_28] : memref<1x8x32xf32, #tpu.memory_space<vmem>>, vector<1x8x32xf32>
    %185 = vector.shape_cast %184 : vector<1x8x32xf32> to vector<8x32xf32>
    %186 = vector.shape_cast %183 : vector<8x32xf32> to vector<1x8x32xf32>
    tpu.vector_store %arg6[%c0_26, %c0_27, %c0_28], %186 {strides = array<i32>} : memref<1x8x32xf32, #tpu.memory_space<vmem>>, vector<1x8x32xf32>,
    return
  }
  func.func @transform_0(%arg0: i32) -> (i32, i32) {
    %c0_i32 = arith.constant 0 : i32
    %c0_i32_0 = arith.constant 0 : i32
    %c0_i32_1 = arith.constant 0 : i32
    return %c0_i32, %c0_i32_0 : i32, i32
  }
  func.func @transform_1(%arg0: i32) -> (i32, i32) {
    %c0_i32 = arith.constant 0 : i32
    %c0_i32_0 = arith.constant 0 : i32
    %c0_i32_1 = arith.constant 0 : i32
    return %c0_i32, %c0_i32_0 : i32, i32
  }
  func.func @transform_2(%arg0: i32) -> (i32, i32) {
    %c0_i32 = arith.constant 0 : i32
    %c0_i32_0 = arith.constant 0 : i32
    %c0_i32_1 = arith.constant 0 : i32
    return %c0_i32, %c0_i32_0 : i32, i32
  }
  func.func @transform_3(%arg0: i32) -> (i32, i32) {
    %c0_i32 = arith.constant 0 : i32
    %c0_i32_0 = arith.constant 0 : i32
    %c0_i32_1 = arith.constant 0 : i32
    return %c0_i32, %c0_i32_0 : i32, i32
  }
  func.func @transform_4(%arg0: i32) -> (i32, i32) {
    %c0_i32 = arith.constant 0 : i32
    %c0_i32_0 = arith.constant 0 : i32
    %c0_i32_1 = arith.constant 0 : i32
    return %c0_i32, %c0_i32_0 : i32, i32
  }
  func.func @transform_5(%arg0: i32) -> (i32, i32, i32) {
    %c0_i32 = arith.constant 0 : i32
    %c0_i32_0 = arith.constant 0 : i32
    %c0_i32_1 = arith.constant 0 : i32
    %c0_i32_2 = arith.constant 0 : i32
    return %c0_i32, %c0_i32_0, %c0_i32_1 : i32, i32, i32
  }
}

</mosaic_0001>

<bundles_post_ra>
// kernel: tpu_custom_call.1
= control target key start
LH: loop header
LB: loop body
LE: loop exit
PB: predicated region body
PF: predicated region fallthrough
CT: control target
= control target key end

     0   :  { %10 = vsyncpa [#allocation3], 0  ;;  %s1761_s0 = inlined_call_operand.vmem [shape: s32[64,1], index: 0, kind: input, shape index: {}]   ;;  %s1762_s1 = inlined_call_operand.vmem [shape: f32[50,96], index: 1, kind: input, shape index: {}]   ;;  %s1763_s2 = inlined_call_operand.hbm [shape: f32[32,96], index: 2, kind: input, shape index: {}]   ;;  %s1764_s3 = inlined_call_operand.vmem [shape: f32[1,96], index: 3, kind: input, shape index: {}]   ;;  %s1765_s4 = inlined_call_operand.vmem [shape: f32[1,32], index: 4, kind: input, shape index: {}]   ;;  %s1766_s5 = inlined_call_operand.hbm [shape: f32[1,8,32], index: 5, kind: output, shape index: {}]  }
   0x1   :  { %11 = vsyncpa [#allocation4], 0  ;;  %s1485_s18 = smov [#allocation2]   ;;  %s1437_s22 = scalar_lea.hbm %s1763_s2, 512 }
   0x2   :  { %s21_s19 = sshll.u32 %s1485_s18, 4  ;;  %p1438_p0 = scmp.ne.s32.totalorder %s1763_s2, %s1437_s22  ;;  %s22_s19 = int_to_ptr.vmem [resolvable:$true] %s21_s19 }
   0x3   :  { %p1441_p1 = scmp.lt.u32.totalorder %s1437_s22, %s1763_s2 }
   0x5   :  { %p1443_p2 = pnand %p1441_p1, %p1438_p0 }
   0x7   :  { %1446 = shalt.err (!%p1443_p2)
}
   0x8   :  { %s1447_s27 = scalar_lea.vmem %s22_s19, 512  ;;  %p1452_p4 = scmp.lt.s32.totalorder %s22_s19, %s22_s19 }
   0x9   :  { %p1448_p3 = scmp.ne.s32.totalorder %s22_s19, %s1447_s27  ;;  %p1453_p5 = scmp.lt.s32.totalorder %s1447_s27, %s1447_s27 }
   0xb   :  { %p1454_p6 = por %p1453_p5, %p1452_p4 }
   0xd   :  { %p1455_p7 = pnand %p1454_p6, %p1448_p3 }
   0xf   :  { %1458 = shalt.err (!%p1455_p7)
}
  0x10   :  { %s1486_s28 = smov 128   ;;  %s1487_s29 = smov 8  }
  0x11   :  { %27 = dma.hbm_to_vmem [thread:$0]  %s1763_s2, 512, %s22_s19, [#allocation3], %s1486_s28, %s1486_s28, %s1487_s29  }
  0x12   :  { %1481 = dma.done.wait [#allocation3], 512  }
  0x13   :  { %1482 = vsyncadd [#allocation3], 4294966784  ;;  %v1488_v0 = vmov 0   ;;  %v1489_v1 = vmov 0.0|0.0   ;;  %vm1490_vm0 = vmmov 0   ;;  %v1491_v2 = vmov 0.0  }
  0x14   :  { %1387 = vset.pattern.permute.xlu0 %v1488_v0  ;;  %1328 = vmatprep.subr.bf16.mxu1 %v1489_v1  ;;  %v35_v3 = vld [vmem:[%s1761_s0] sm:$0xff]  ;;  %v36_v4 = vld [vmem:[%s1761_s0 + $0x8] sm:$0xff]  ;;  %v241_v5 = vld [vmem:[#allocation2] sm:$0xff]  ;;  %s1492_s24 = smov 64   ;;  %vm132_vm1 = vcmask 1041408   ;;  %v43_v22 = vlaneseq  ;;  %vm107_vm2 = vcmask 408576  }
  0x15   :  { %1236 = vmatprep.mubr.msk.f32.mxu1 %vm1490_vm0, %v1491_v2  ;;  %1388 = vset.pattern.permute.xlu1 %v1488_v0  ;;  %v242_v6 = vld [vmem:[#allocation2 + $0x8] sm:$0xff]  ;;  %v243_v7 = vld [vmem:[#allocation2 + $0x10] sm:$0xff]  ;;  %v244_v8 = vld [vmem:[#allocation2 + $0x18] sm:$0xff]  ;;  %s1494_s27 = smov 32   ;;  %vm251_vm5 = vcmask 261120  }
  0x16   :  { %46 = vperm.xlu0 %1387, %v35_v3   ;;  %v1547_v9 = vpack.c.bf16 %v242_v6, %v241_v5  ;;  %v93_v10 = vld [vmem:[%s1762_s1] sm:$0xff]  ;;  %v94_v11 = vld [vmem:[%s1762_s1 + $0x8] sm:$0xff]  ;;  %v95_v12 = vld [vmem:[%s1762_s1 + $0x10] sm:$0xff]  ;;  %v1562_v15 = vpack.c.bf16 %v244_v8, %v243_v7  ;;  %v1588_v23 = vand.u32 127, %v43_v22 }
  0x17   :  { %v1316_v13 = vpack.c.bf16 %v94_v11, %v93_v10  ;;  %v96_v14 = vld [vmem:[%s1762_s1 + $0x18] sm:$0xff]  ;;  %v97_v17 = vld [vmem:[%s1762_s1 + $0x20] sm:$0xff]  ;;  %v98_v18 = vld [vmem:[%s1762_s1 + $0x28] sm:$0xff] }
  0x18   :  { %1330 = vmatpush3.bf16.msra.mxu1 %v1547_v9  ;;  %v1320_v16 = vpack.c.bf16 %v96_v14, %v95_v12  ;;  %v1131_v19 = vld [vmem:[%s1765_s4] ss:$0 sm:$0xff]  ;;  %v1324_v20 = vpack.c.bf16 %v98_v18, %v97_v17  ;;  %v99_v21 = vld [vmem:[%s1762_s1 + $0x30] sm:$0x3]  ;;  %v38_v11 = vld [vmem:[%s1761_s0 + $0x18] sm:$0xff] }
  0x19   :  { %1331 = vmatprep.subr.bf16.mxu1 %v1489_v1  ;;  %1317 = vmatprep.subr.bf16.mxu0 %v1316_v13  ;;  %v1607_v32 = vld [vmem:[%s1764_s3] ss:$0 sm:$0xff]  ;;  %s1493_s3 = smov 96   ;;  %v37_v7 = vld [vmem:[%s1761_s0 + $0x10] sm:$0xff] }
  0x1a   :  { %49 = vperm.xlu0 %1387, %v36_v4   ;;  %1319 = vmatpush3.bf16.msra.mxu0 %v1316_v13 }
  0x1b   :  { %1321 = vmatprep.subr.bf16.mxu0 %v1320_v16  ;;  %332 = vrot.lane.b32.xlu1 %v1131_v19, %s1492_s24 }
  0x1c   :  { %1333 = vmatpush3.bf16.msra.mxu1 %v1562_v15 }
  0x1d   :  { %1334 = vmatprep.subr.bf16.mxu1 %v1489_v1 }
  0x1e   :  { %1323 = vmatpush3.bf16.msra.mxu0 %v1320_v16 }
  0x1f   :  { %1237 = vmatmul.mubr.f32.vlgmr.msra.gmra.mrb[0].mxu1 %v1491_v2  ;;  %1325 = vmatprep.subr.bf16.mxu0 %v1324_v20 }
  0x20   :  { %1336 = vmatpush3.bf16.msra.mxu1 %v1547_v9  ;;  %1247 = vmatprep.mubr.msk.f32.mxu1 %vm1490_vm0, %v1491_v2 }
  0x21   :  { %1337 = vmatprep.subr.bf16.mxu1 %v1489_v1 }
  0x22   :  { %1327 = vmatpush3.bf16.msra.mxu0 %v1324_v20 }
  0x23   :  { %1214 = vmatprep.subr.msk.mxu0 %vm132_vm1, %v99_v21 }
  0x24   :  { %1339 = vmatpush3.bf16.msra.mxu1 %v1562_v15 }
  0x25   :  { %1340 = vmatprep.subr.bf16.mxu1 %v1489_v1 }
  0x26   :  { %1215 = vmatpush3.msk.msra.mxu0 %vm132_vm1, %v99_v21 }
  0x27   :  { %1346 = vmatprep.subr.bf16.mxu0 %v1489_v1 }
  0x8d   :  { %v1600_v28 = vpop.permute.xlu1 %332 }
  0x95   :  { %v47_v24 = vpop.permute.xlu0 %46 }
  0x96   :  { %vm69_vm3 = vcmp.eq.s32.totalorder %v1588_v23, %v47_v24 }
  0x97   :  { %v1113_v25 = vsel %vm69_vm3, 1.0, %v1491_v2 }
  0x98   :  { %1216 = vmatprep.mubr.msk.f32.mxu0 %vm107_vm2, %v1113_v25 }
  0x99   :  { %v50_v26 = vpop.permute.xlu0 %49 }
  0x9a   :  { %vm70_vm4 = vcmp.eq.s32.totalorder %v1588_v23, %v50_v26 }
  0x9b   :  { %v1114_v27 = vsel %vm70_vm4, 1.0, %v1491_v2 }
  0x9c   :  { %1217 = vmatmul.mubr.msk.f32.vlgmr.msra.gmra.mrb[0].mxu0 %vm107_vm2, %v1114_v27 }
  0x9d   :  { %1348 = vmatpush3.bf16.msra.mxu0 %v1547_v9 }
  0x9e   :  { %1349 = vmatprep.subr.bf16.mxu0 %v1489_v1 }
  0xa1   :  { %1351 = vmatpush3.bf16.msra.mxu0 %v1562_v15 }
  0xa2   :  { %1358 = vmatprep.subr.bf16.mxu0 %v1489_v1 }
  0xf2   :  { %v321_v29 = vpop.f32.mrb[0].mxu1 }
  0xf3   :  { %v1238_v30 = vpop.f32.mrb[1].mxu1  ;;  %v335_v31 = vadd.f32 %v1600_v28, %v321_v29 }
  0xf5   :  { %337 = vrot.lane.b32.xlu1 %v335_v31, %s1492_s24 }
 0x167   :  { %v338_v40 = vpop.permute.xlu1 %337 }
 0x16f   :  { %v1218_v33 = vpop.f32.mrb[0].mxu0 }
 0x170   :  { %v202_v34 = vpop.f32.mrb[1].mxu0  ;;  %v208_v55 = vadd.f32 %v1218_v33, %v1607_v32 }
 0x171   :  { %v203_v35 = vadd.f32 %v1607_v32, %v202_v34 }
 0x173   :  { %v325_v36 = vadd.f32 %v321_v29, %v203_v35 }
 0x175   :  { %v1132_v37 = vmul.f32 -1.442695, %v325_v36 }
 0x177   :  { %1389 = vpow2.f32 %v1132_v37 }
 0x181   :  { %v1390_v38 = vpop.eup %1389 }
 0x182   :  { %v329_v39 = vadd.f32 1.0, %v1390_v38  ;;  %v39_v38 = vld [vmem:[%s1761_s0 + $0x20] sm:$0xff] }
 0x184   :  { %1391 = vrcp.f32 %v329_v39  ;;  %v41_v39 = vld [vmem:[%s1761_s0 + $0x30] sm:$0xff] }
 0x18e   :  { %v1392_v41 = vpop.eup %1391 }
 0x18f   :  { %v340_v42 = vmul.f32 %v1392_v41, %v338_v40 }
 0x191   :  { %342 = vrot.lane.b32.xlu0 %v340_v42, %s1492_s24  ;;  %v40_v42 = vld [vmem:[%s1761_s0 + $0x28] sm:$0xff] }
 0x203   :  { %v343_v43 = vpop.permute.xlu0 %342 }
 0x204   :  { %v345_v44 = vadd.f32 %v343_v43, %v203_v35  ;;  %v42_v43 = vld [vmem:[%s1761_s0 + $0x38] sm:$0xff]  ;;  %s1495_s0 = smov [#allocation5]  }
 0x205   :  { %s1104_s14 = sshll.u32 %s1495_s0, 4  ;;  %s1105_s14 = int_to_ptr.vmem [resolvable:$true] %s1104_s14 }
 0x206   :  { %1393 = vtanh.f32 %v345_v44  ;;  %s1459_s15 = scalar_lea.vmem %s1105_s14, 128  ;;  %p1464_p9 = scmp.lt.s32.totalorder %s1105_s14, %s1105_s14 }
 0x207   :  { %p1460_p8 = scmp.ne.s32.totalorder %s1105_s14, %s1459_s15  ;;  %p1465_p10 = scmp.lt.s32.totalorder %s1459_s15, %s1459_s15 }
 0x209   :  { %p1466_p11 = por %p1465_p10, %p1464_p9 }
 0x20b   :  { %p1467_p12 = pnand %p1466_p11, %p1460_p8 }
 0x210   :  { %v1394_v45 = vpop.eup %1393 }
 0x211   :  { %v347_v46 = vsub.f32 0.0, %v1394_v45 }
 0x213   :  { %349 = vrot.lane.b32.xlu1 %v347_v46, %s1493_s3 }
 0x285   :  { %v350_v47 = vpop.permute.xlu1 %349 }
 0x286   :  { %v352_v48 = vmul.f32 %v1392_v41, %v350_v47 }
 0x288   :  { %354 = vrot.lane.b32.xlu0 %v352_v48, %s1494_s27 }
 0x2fa   :  { %v355_v49 = vpop.permute.xlu0 %354 }
 0x2fb   :  { %v357_v50 = vadd.f32 %v1394_v45, %v355_v49 }
 0x2fd   :  { %359 = vrot.lane.b32.xlu1 %v357_v50, %s1492_s24 }
 0x36f   :  { %v360_v51 = vpop.permute.xlu1 %359 }
 0x370   :  { %1248 = vmatmul.mubr.msk.f32.vlgmr.msra.gmra.mrb[2].mxu1 %vm251_vm5, %v360_v51 }
 0x371   :  { %1342 = vmatpush3.bf16.msra.mxu1 %v1547_v9  ;;  %1258 = vmatprep.mubr.msk.f32.mxu1 %vm1490_vm0, %v1491_v2 }
 0x372   :  { %1343 = vmatprep.subr.bf16.mxu1 %v1489_v1 }
 0x375   :  { %1345 = vmatpush3.bf16.msra.mxu1 %v1562_v15 }
 0x376   :  { %1352 = vmatprep.subr.bf16.mxu1 %v1489_v1 }
 0x443   :  { %v429_v52 = vpop.f32.mrb[2].mxu1 }
 0x444   :  { %v440_v53 = vadd.f32 %v429_v52, %v1600_v28  ;;  %v1249_v54 = vpop.f32.mrb[3].mxu1  ;;  %v433_v56 = vadd.f32 %v429_v52, %v208_v55 }
 0x446   :  { %442 = vrot.lane.b32.xlu0 %v440_v53, %s1492_s24  ;;  %v1134_v57 = vmul.f32 -1.442695, %v433_v56 }
 0x448   :  { %1395 = vpow2.f32 %v1134_v57 }
 0x452   :  { %v1396_v58 = vpop.eup %1395 }
 0x453   :  { %v437_v59 = vadd.f32 1.0, %v1396_v58 }
 0x455   :  { %1397 = vrcp.f32 %v437_v59 }
 0x45f   :  { %v1398_v60 = vpop.eup %1397 }
 0x4b8   :  { %v443_v61 = vpop.permute.xlu0 %442 }
 0x4b9   :  { %v445_v62 = vmul.f32 %v1398_v60, %v443_v61 }
 0x4bb   :  { %447 = vrot.lane.b32.xlu1 %v445_v62, %s1492_s24 }
 0x52d   :  { %v448_v63 = vpop.permute.xlu1 %447 }
 0x52e   :  { %v450_v0 = vadd.f32 %v448_v63, %v208_v55 }
 0x530   :  { %1399 = vtanh.f32 %v450_v0 }
 0x53a   :  { %v1400_v3 = vpop.eup %1399 }
 0x53b   :  { %v452_v4 = vsub.f32 %v357_v50, %v1400_v3 }
 0x53d   :  { %454 = vrot.lane.b32.xlu0 %v452_v4, %s1493_s3 }
 0x5af   :  { %v455_v5 = vpop.permute.xlu0 %454 }
 0x5b0   :  { %v457_v6 = vmul.f32 %v1398_v60, %v455_v5 }
 0x5b2   :  { %459 = vrot.lane.b32.xlu1 %v457_v6, %s1494_s27 }
 0x5b6   :  { %52 = vperm.xlu1 %1388, %v37_v7  }
 0x624   :  { %v460_v8 = vpop.permute.xlu1 %459 }
 0x625   :  { %v462_v10 = vadd.f32 %v1400_v3, %v460_v8 }
 0x627   :  { %464 = vrot.lane.b32.xlu0 %v462_v10, %s1492_s24 }
 0x62b   :  { %55 = vperm.xlu0 %1387, %v38_v11  }
 0x635   :  { %v53_v12 = vpop.permute.xlu1 %52 }
 0x636   :  { %vm71_vm6 = vcmp.eq.s32.totalorder %v1588_v23, %v53_v12 }
 0x637   :  { %v1115_v13 = vsel %vm71_vm6, 1.0, %v1491_v2 }
 0x638   :  { %1219 = vmatprep.mubr.msk.f32.mxu0 %vm107_vm2, %v1115_v13 }
 0x699   :  { %v465_v14 = vpop.permute.xlu0 %464 }
 0x69a   :  { %1259 = vmatmul.mubr.msk.f32.vlgmr.msra.gmra.mrb[4].mxu1 %vm251_vm5, %v465_v14 }
 0x69b   :  { %1354 = vmatpush3.bf16.msra.mxu1 %v1547_v9  ;;  %1280 = vmatprep.mubr.msk.f32.mxu1 %vm1490_vm0, %v1491_v2 }
 0x69c   :  { %1355 = vmatprep.subr.bf16.mxu1 %v1489_v1 }
 0x69f   :  { %1357 = vmatpush3.bf16.msra.mxu1 %v1562_v15 }
 0x6a0   :  { %1364 = vmatprep.subr.bf16.mxu1 %v1489_v1 }
 0x6aa   :  { %v56_v16 = vpop.permute.xlu0 %55 }
 0x6ab   :  { %vm72_vm7 = vcmp.eq.s32.totalorder %v1588_v23, %v56_v16 }
 0x6ac   :  { %v1116_v17 = vsel %vm72_vm7, 1.0, %v1491_v2 }
 0x6ad   :  { %1220 = vmatmul.mubr.msk.f32.gmra.mrb[2].mxu0 %vm107_vm2, %v1116_v17 }
 0x76d   :  { %v534_v18 = vpop.f32.mrb[4].mxu1 }
 0x76e   :  { %v545_v19 = vadd.f32 %v534_v18, %v1600_v28  ;;  %v1260_v20 = vpop.f32.mrb[5].mxu1 }
 0x770   :  { %547 = vrot.lane.b32.xlu1 %v545_v19, %s1492_s24 }
 0x780   :  { %v1649_v21 = vpop.f32.mrb[2].mxu0 }
 0x781   :  { %v212_v22 = vpop.f32.mrb[3].mxu0  ;;  %v218_v61 = vadd.f32 %v1649_v21, %v1607_v32 }
 0x782   :  { %v213_v24 = vadd.f32 %v1607_v32, %v212_v22 }
 0x784   :  { %v538_v25 = vadd.f32 %v534_v18, %v213_v24 }
 0x786   :  { %v1136_v26 = vmul.f32 -1.442695, %v538_v25 }
 0x788   :  { %1401 = vpow2.f32 %v1136_v26 }
 0x792   :  { %v1402_v27 = vpop.eup %1401 }
 0x793   :  { %v542_v29 = vadd.f32 1.0, %v1402_v27 }
 0x795   :  { %1403 = vrcp.f32 %v542_v29 }
 0x79f   :  { %v1404_v30 = vpop.eup %1403 }
 0x7e2   :  { %v548_v31 = vpop.permute.xlu1 %547 }
 0x7e3   :  { %v550_v33 = vmul.f32 %v1404_v30, %v548_v31 }
 0x7e5   :  { %552 = vrot.lane.b32.xlu0 %v550_v33, %s1492_s24 }
 0x857   :  { %v553_v34 = vpop.permute.xlu0 %552 }
 0x858   :  { %v555_v35 = vadd.f32 %v553_v34, %v213_v24 }
 0x85a   :  { %1405 = vtanh.f32 %v555_v35 }
 0x864   :  { %v1406_v36 = vpop.eup %1405 }
 0x865   :  { %v557_v37 = vsub.f32 %v462_v10, %v1406_v36 }
 0x867   :  { %559 = vrot.lane.b32.xlu1 %v557_v37, %s1493_s3 }
 0x86b   :  { %58 = vperm.xlu1 %1388, %v39_v38  }
 0x86f   :  { %64 = vperm.xlu1 %1388, %v41_v39  }
 0x8d9   :  { %v560_v40 = vpop.permute.xlu1 %559 }
 0x8da   :  { %v562_v41 = vmul.f32 %v1404_v30, %v560_v40 }
 0x8dc   :  { %564 = vrot.lane.b32.xlu0 %v562_v41, %s1494_s27 }
 0x8e0   :  { %61 = vperm.xlu0 %1387, %v40_v42  }
 0x8e4   :  { %67 = vperm.xlu0 %1387, %v42_v43  }
 0x8ea   :  { %v59_v44 = vpop.permute.xlu1 %58 }
 0x8eb   :  { %vm73_vm8 = vcmp.eq.s32.totalorder %v1588_v23, %v59_v44 }
 0x8ec   :  { %v1117_v45 = vsel %vm73_vm8, 1.0, %v1491_v2 }
 0x8ed   :  { %1222 = vmatprep.mubr.msk.f32.mxu0 %vm107_vm2, %v1117_v45 }
 0x8ee   :  { %v65_v48 = vpop.permute.xlu1 %64 }
 0x8ef   :  { %vm75_vm9 = vcmp.eq.s32.totalorder %v1588_v23, %v65_v48 }
 0x8f0   :  { %v1119_v51 = vsel %vm75_vm9, 1.0, %v1491_v2 }
 0x94e   :  { %v565_v46 = vpop.permute.xlu0 %564 }
 0x94f   :  { %v567_v47 = vadd.f32 %v1406_v36, %v565_v46 }
 0x951   :  { %569 = vrot.lane.b32.xlu1 %v567_v47, %s1492_s24 }
 0x95f   :  { %v62_v49 = vpop.permute.xlu0 %61 }
 0x960   :  { %vm74_vm10 = vcmp.eq.s32.totalorder %v1588_v23, %v62_v49 }
 0x961   :  { %v1118_v50 = vsel %vm74_vm10, 1.0, %v1491_v2 }
 0x962   :  { %1223 = vmatmul.mubr.msk.f32.gmra.mrb[4].mxu0 %vm107_vm2, %v1118_v50 }
 0x963   :  { %v68_v52 = vpop.permute.xlu0 %67  ;;  %1225 = vmatprep.mubr.msk.f32.mxu0 %vm107_vm2, %v1119_v51 }
 0x964   :  { %vm76_vm11 = vcmp.eq.s32.totalorder %v1588_v23, %v68_v52 }
 0x965   :  { %v1120_v53 = vsel %vm76_vm11, 1.0, %v1491_v2 }
 0x966   :  { %1226 = vmatmul.mubr.msk.f32.gmra.mrb[6].mxu0 %vm107_vm2, %v1120_v53 }
 0x967   :  { %1269 = vmatprep.mubr.msk.f32.mxu0 %vm1490_vm0, %v1491_v2 }
 0x9c3   :  { %v570_v54 = vpop.permute.xlu1 %569 }
 0x9c4   :  { %1270 = vmatmul.mubr.msk.f32.vlgmr.msra.gmra.mrb[8].mxu0 %vm251_vm5, %v570_v54 }
 0x9c5   :  { %1360 = vmatpush3.bf16.msra.mxu0 %v1547_v9  ;;  %1291 = vmatprep.mubr.msk.f32.mxu0 %vm1490_vm0, %v1491_v2 }
 0x9c6   :  { %1361 = vmatprep.subr.bf16.mxu0 %v1489_v1 }
 0x9c9   :  { %1363 = vmatpush3.bf16.msra.mxu0 %v1562_v15 }
 0x9ca   :  { %1370 = vmatprep.subr.bf16.mxu0 %v1489_v1 }
 0xa35   :  { %v1689_v23 = vpop.f32.mrb[4].mxu0 }
 0xa36   :  { %v222_v55 = vpop.f32.mrb[5].mxu0  ;;  %v228_v44 = vadd.f32 %v1689_v23, %v1607_v32 }
 0xa37   :  { %v223_v21 = vadd.f32 %v1607_v32, %v222_v55 }
 0xa39   :  { %v1691_v56 = vpop.f32.mrb[6].mxu0 }
 0xa3a   :  { %v1693_v57 = vpop.f32.mrb[7].mxu0 }
 0xa97   :  { %v639_v58 = vpop.f32.mrb[8].mxu0 }
 0xa98   :  { %v650_v59 = vadd.f32 %v639_v58, %v1600_v28  ;;  %v1271_v60 = vpop.f32.mrb[9].mxu0  ;;  %v643_v62 = vadd.f32 %v639_v58, %v218_v61 }
 0xa9a   :  { %652 = vrot.lane.b32.xlu0 %v650_v59, %s1492_s24  ;;  %v1138_v63 = vmul.f32 -1.442695, %v643_v62 }
 0xa9c   :  { %1407 = vpow2.f32 %v1138_v63 }
 0xaa6   :  { %v1408_v0 = vpop.eup %1407 }
 0xaa7   :  { %v647_v3 = vadd.f32 1.0, %v1408_v0 }
 0xaa9   :  { %1409 = vrcp.f32 %v647_v3 }
 0xab3   :  { %v1410_v4 = vpop.eup %1409 }
 0xb0c   :  { %v653_v5 = vpop.permute.xlu0 %652 }
 0xb0d   :  { %v655_v6 = vmul.f32 %v1410_v4, %v653_v5 }
 0xb0f   :  { %657 = vrot.lane.b32.xlu1 %v655_v6, %s1492_s24 }
 0xb81   :  { %v658_v7 = vpop.permute.xlu1 %657 }
 0xb82   :  { %v660_v8 = vadd.f32 %v658_v7, %v218_v61  ;;  %v233_v61 = vadd.f32 %v1607_v32, %v1693_v57 }
 0xb84   :  { %1411 = vtanh.f32 %v660_v8 }
 0xb8e   :  { %v1412_v10 = vpop.eup %1411 }
 0xb8f   :  { %v662_v11 = vsub.f32 %v567_v47, %v1412_v10 }
 0xb91   :  { %664 = vrot.lane.b32.xlu0 %v662_v11, %s1493_s3 }
 0xc03   :  { %v665_v12 = vpop.permute.xlu0 %664 }
 0xc04   :  { %v667_v13 = vmul.f32 %v1410_v4, %v665_v12 }
 0xc06   :  { %669 = vrot.lane.b32.xlu1 %v667_v13, %s1494_s27 }
 0xc78   :  { %v670_v14 = vpop.permute.xlu1 %669 }
 0xc79   :  { %v672_v16 = vadd.f32 %v1412_v10, %v670_v14 }
 0xc7b   :  { %674 = vrot.lane.b32.xlu0 %v672_v16, %s1492_s24 }
 0xced   :  { %v675_v17 = vpop.permute.xlu0 %674 }
 0xcee   :  { %1281 = vmatmul.mubr.msk.f32.vlgmr.msra.gmra.mrb[6].mxu1 %vm251_vm5, %v675_v17 }
 0xcef   :  { %1366 = vmatpush3.bf16.msra.mxu1 %v1547_v9  ;;  %1302 = vmatprep.mubr.msk.f32.mxu1 %vm1490_vm0, %v1491_v2 }
 0xcf0   :  { %1367 = vmatprep.subr.bf16.mxu1 %v1489_v1 }
 0xcf3   :  { %1369 = vmatpush3.bf16.msra.mxu1 %v1562_v15 }
 0xdc1   :  { %v744_v18 = vpop.f32.mrb[6].mxu1 }
 0xdc2   :  { %v755_v19 = vadd.f32 %v744_v18, %v1600_v28  ;;  %v1282_v20 = vpop.f32.mrb[7].mxu1  ;;  %v748_v22 = vadd.f32 %v744_v18, %v223_v21 }
 0xdc3   :  { %v238_v20 = vadd.f32 %v1691_v56, %v1607_v32 }
 0xdc4   :  { %757 = vrot.lane.b32.xlu1 %v755_v19, %s1492_s24  ;;  %v1140_v24 = vmul.f32 -1.442695, %v748_v22 }
 0xdc6   :  { %1413 = vpow2.f32 %v1140_v24 }
 0xdd0   :  { %v1414_v25 = vpop.eup %1413 }
 0xdd1   :  { %v752_v26 = vadd.f32 1.0, %v1414_v25 }
 0xdd3   :  { %1415 = vrcp.f32 %v752_v26 }
 0xddd   :  { %v1416_v27 = vpop.eup %1415 }
 0xe36   :  { %v758_v29 = vpop.permute.xlu1 %757 }
 0xe37   :  { %v760_v30 = vmul.f32 %v1416_v27, %v758_v29 }
 0xe39   :  { %762 = vrot.lane.b32.xlu0 %v760_v30, %s1492_s24 }
 0xeab   :  { %v763_v31 = vpop.permute.xlu0 %762 }
 0xeac   :  { %v765_v33 = vadd.f32 %v763_v31, %v223_v21 }
 0xeae   :  { %1417 = vtanh.f32 %v765_v33 }
 0xeb8   :  { %v1418_v34 = vpop.eup %1417 }
 0xeb9   :  { %v767_v35 = vsub.f32 %v672_v16, %v1418_v34 }
 0xebb   :  { %769 = vrot.lane.b32.xlu1 %v767_v35, %s1493_s3 }
 0xf2d   :  { %v770_v36 = vpop.permute.xlu1 %769 }
 0xf2e   :  { %v772_v37 = vmul.f32 %v1416_v27, %v770_v36 }
 0xf30   :  { %774 = vrot.lane.b32.xlu0 %v772_v37, %s1494_s27 }
 0xfa2   :  { %v775_v38 = vpop.permute.xlu0 %774 }
 0xfa3   :  { %v777_v39 = vadd.f32 %v1418_v34, %v775_v38 }
 0xfa5   :  { %779 = vrot.lane.b32.xlu1 %v777_v39, %s1492_s24 }
0x1017   :  { %v780_v40 = vpop.permute.xlu1 %779 }
0x1018   :  { %1292 = vmatmul.mubr.msk.f32.vlgmr.msra.gmra.mrb[10].mxu0 %vm251_vm5, %v780_v40 }
0x1019   :  { %1372 = vmatpush3.bf16.msra.mxu0 %v1547_v9  ;;  %1313 = vmatprep.mubr.msk.f32.mxu0 %vm1490_vm0, %v1491_v2 }
0x101a   :  { %1373 = vmatprep.subr.bf16.mxu0 %v1489_v1 }
0x101d   :  { %1375 = vmatpush3.bf16.msra.mxu0 %v1562_v15 }
0x10eb   :  { %v849_v41 = vpop.f32.mrb[10].mxu0 }
0x10ec   :  { %v860_v42 = vadd.f32 %v849_v41, %v1600_v28  ;;  %v1293_v43 = vpop.f32.mrb[11].mxu0  ;;  %v853_v45 = vadd.f32 %v849_v41, %v228_v44 }
0x10ee   :  { %862 = vrot.lane.b32.xlu0 %v860_v42, %s1492_s24  ;;  %v1142_v46 = vmul.f32 -1.442695, %v853_v45 }
0x10f0   :  { %1419 = vpow2.f32 %v1142_v46 }
0x10fa   :  { %v1420_v9 = vpop.eup %1419 }
0x10fb   :  { %v857_v47 = vadd.f32 1.0, %v1420_v9 }
0x10fd   :  { %1421 = vrcp.f32 %v857_v47 }
0x1107   :  { %v1422_v2 = vpop.eup %1421 }
0x1160   :  { %v863_v48 = vpop.permute.xlu0 %862 }
0x1161   :  { %v865_v1 = vmul.f32 %v1422_v2, %v863_v48 }
0x1163   :  { %867 = vrot.lane.b32.xlu1 %v865_v1, %s1492_s24 }
0x11d5   :  { %v868_v15 = vpop.permute.xlu1 %867 }
0x11d6   :  { %v870_v49 = vadd.f32 %v868_v15, %v228_v44 }
0x11d8   :  { %1423 = vtanh.f32 %v870_v49 }
0x11e2   :  { %v1424_v50 = vpop.eup %1423 }
0x11e3   :  { %v872_v51 = vsub.f32 %v777_v39, %v1424_v50 }
0x11e5   :  { %874 = vrot.lane.b32.xlu0 %v872_v51, %s1493_s3 }
0x1257   :  { %v875_v52 = vpop.permute.xlu0 %874 }
0x1258   :  { %v877_v53 = vmul.f32 %v1422_v2, %v875_v52 }
0x125a   :  { %879 = vrot.lane.b32.xlu1 %v877_v53, %s1494_s27 }
0x12cc   :  { %v880_v54 = vpop.permute.xlu1 %879 }
0x12cd   :  { %v882_v23 = vadd.f32 %v1424_v50, %v880_v54 }
0x12cf   :  { %884 = vrot.lane.b32.xlu0 %v882_v23, %s1492_s24 }
0x1341   :  { %v885_v55 = vpop.permute.xlu0 %884 }
0x1342   :  { %1303 = vmatmul.mubr.msk.f32.vlgmr.msra.gmra.mrb[8].mxu1 %vm251_vm5, %v885_v55 }
0x1415   :  { %v954_v58 = vpop.f32.mrb[8].mxu1 }
0x1416   :  { %v965_v59 = vadd.f32 %v954_v58, %v1600_v28  ;;  %v1304_v60 = vpop.f32.mrb[9].mxu1  ;;  %v958_v62 = vadd.f32 %v954_v58, %v233_v61 }
0x1418   :  { %967 = vrot.lane.b32.xlu1 %v965_v59, %s1492_s24  ;;  %v1144_v63 = vmul.f32 -1.442695, %v958_v62 }
0x141a   :  { %1425 = vpow2.f32 %v1144_v63 }
0x1424   :  { %v1426_v0 = vpop.eup %1425 }
0x1425   :  { %v962_v3 = vadd.f32 1.0, %v1426_v0 }
0x1427   :  { %1427 = vrcp.f32 %v962_v3 }
0x1431   :  { %v1428_v4 = vpop.eup %1427 }
0x148a   :  { %v968_v5 = vpop.permute.xlu1 %967 }
0x148b   :  { %v970_v6 = vmul.f32 %v1428_v4, %v968_v5 }
0x148d   :  { %972 = vrot.lane.b32.xlu0 %v970_v6, %s1492_s24 }
0x14ff   :  { %v973_v7 = vpop.permute.xlu0 %972 }
0x1500   :  { %v975_v8 = vadd.f32 %v973_v7, %v233_v61 }
0x1502   :  { %1429 = vtanh.f32 %v975_v8 }
0x150c   :  { %v1430_v10 = vpop.eup %1429 }
0x150d   :  { %v977_v11 = vsub.f32 %v882_v23, %v1430_v10 }
0x150f   :  { %979 = vrot.lane.b32.xlu1 %v977_v11, %s1493_s3 }
0x1581   :  { %v980_v12 = vpop.permute.xlu1 %979 }
0x1582   :  { %v982_v57 = vmul.f32 %v1428_v4, %v980_v12 }
0x1584   :  { %984 = vrot.lane.b32.xlu0 %v982_v57, %s1494_s27 }
0x15f6   :  { %v985_v13 = vpop.permute.xlu0 %984 }
0x15f7   :  { %v987_v14 = vadd.f32 %v1430_v10, %v985_v13 }
0x15f9   :  { %989 = vrot.lane.b32.xlu1 %v987_v14, %s1492_s24 }
0x166b   :  { %v990_v16 = vpop.permute.xlu1 %989 }
0x166c   :  { %1314 = vmatmul.mubr.msk.f32.vlgmr.msra.gmra.mrb[12].mxu0 %vm251_vm5, %v990_v16 }
0x173f   :  { %v1059_v17 = vpop.f32.mrb[12].mxu0 }
0x1740   :  { %v1070_v18 = vadd.f32 %v1059_v17, %v1600_v28  ;;  %v1315_v19 = vpop.f32.mrb[13].mxu0  ;;  %v1063_v21 = vadd.f32 %v1059_v17, %v238_v20 }
0x1742   :  { %1072 = vrot.lane.b32.xlu0 %v1070_v18, %s1492_s24  ;;  %v1146_v22 = vmul.f32 -1.442695, %v1063_v21 }
0x1744   :  { %1431 = vpow2.f32 %v1146_v22 }
0x174e   :  { %v1432_v24 = vpop.eup %1431 }
0x174f   :  { %v1067_v25 = vadd.f32 1.0, %v1432_v24 }
0x1751   :  { %1433 = vrcp.f32 %v1067_v25 }
0x175b   :  { %v1434_v26 = vpop.eup %1433 }
0x17b4   :  { %v1073_v27 = vpop.permute.xlu0 %1072 }
0x17b5   :  { %v1075_v29 = vmul.f32 %v1434_v26, %v1073_v27 }
0x17b7   :  { %1077 = vrot.lane.b32.xlu1 %v1075_v29, %s1492_s24 }
0x1829   :  { %v1078_v30 = vpop.permute.xlu1 %1077 }
0x182a   :  { %v1080_v31 = vadd.f32 %v1078_v30, %v238_v20 }
0x182c   :  { %1435 = vtanh.f32 %v1080_v31 }
0x1836   :  { %v1436_v28 = vpop.eup %1435 }
0x1837   :  { %v1082_v33 = vsub.f32 %v987_v14, %v1436_v28 }
0x1839   :  { %1084 = vrot.lane.b32.xlu0 %v1082_v33, %s1493_s3 }
0x18ab   :  { %v1085_v34 = vpop.permute.xlu0 %1084 }
0x18ac   :  { %v1087_v32 = vmul.f32 %v1434_v26, %v1085_v34 }
0x18ae   :  { %1089 = vrot.lane.b32.xlu1 %v1087_v32, %s1494_s27 }
0x1920   :  { %v1090_v56 = vpop.permute.xlu1 %1089 }
0x1921   :  { %v1092_v35 = vadd.f32 %v1436_v28, %v1090_v56 }
0x1923   :  { %1094 = vrot.lane.b32.xlu0 %v1092_v35, %s1492_s24 }
0x1995   :  { %v1095_v36 = vpop.permute.xlu0 %1094 }
0x1996   :  { %1097 = vst.msk [vmem:[#allocation5] sm:$0xff] %vm251_vm5, %v1095_v36 }
0x1997   :  { %1470 = shalt.err (!%p1467_p12)
}
0x1998   :  { %s1471_s18 = scalar_lea.hbm %s1766_s5, 128 }
0x1999   :  { %p1472_p13 = scmp.ne.s32.totalorder %s1766_s5, %s1471_s18  ;;  %p1475_p0 = scmp.lt.u32.totalorder %s1471_s18, %s1766_s5 }
0x199b   :  { %p1477_p1 = pnand %p1475_p0, %p1472_p13 }
0x199d   :  { %1480 = shalt.err (!%p1477_p1)
}
0x199e   :  { %1107 = dma.vmem_to_hbm [thread:$0]  %s1105_s14, 128, %s1766_s5, [#allocation4]  }
0x199f   :  { %1483 = dma.done.wait [#allocation4], 128  }
0x19a0   :  { %1484 = vsyncadd [#allocation4], 4294967168 }
0x19a1   :  { %1111 = vsyncpa [#allocation3], 1 }
0x19a2   :  { %1112 = vsyncpa [#allocation4], 1 }

</bundles_post_ra>
